<compile_context>
chip_gen: v7x
topology: tpu7x:2x2x1
jax: 0.10.0
libtpu: 0.0.40
codegen_flags: <defaults>
</compile_context>

<pallas_src>
import functools

import numpy as np
import jax
import jax.numpy as jnp
from jax.experimental import pallas as pl
from jax.experimental.pallas import tpu as pltpu


def _round_up(v, m):
    return ((v + m - 1) // m) * m


# ----------------------------------------------------------------------------
# Kernels
# ----------------------------------------------------------------------------
def _linear_kernel(x_ref, w_ref, b_ref, y_ref):
    # iteration == 0 path: y = x @ W_out^T + b_out (W pre-transposed, lane-padded)
    y_ref[...] = (
        jnp.dot(x_ref[...], w_ref[...], preferred_element_type=jnp.float32)
        + b_ref[...]
    )


def _cascade_kernel(x_ref, whxt_ref, bht_ref, whh_ref, whh_in_ref,
                    woutx_ref, wouth_ref, bout_ref, y_ref, ht_ref,
                    *, n_hidden_pad):
    """Cascade forward for one batch tile (lane-dense / MXU formulation).

    x_ref:      (Bt, n_input)
    whxt_ref:   (n_hidden_pad, n_input)       input->hidden weights (pre-transposed)
    bht_ref:    (n_hidden_pad, 1)             hidden biases
    whh_ref:    (n_hidden_pad, n_hidden_pad)  strictly-lower hidden->hidden weights
                                              (VMEM; only earlier-block columns read)
    whh_in_ref: (n_hidden_pad * 8,)           within-block strictly-lower weights,
                                              flattened, SMEM (scalar reads)
    woutx_ref:  (n_input, N_pad)              output weights acting on raw inputs
    wouth_ref:  (n_hidden_pad, N_pad)         output weights on hidden outputs
                                              (padded rows are zero)
    bout_ref:   (1, N_pad)
    y_ref:      (Bt, N_pad)                   lane-dense (padded) output
    ht_ref:     (n_hidden_pad, Bt)            VMEM scratch: hidden activations,
                                              batch on lanes
    """
    x = x_ref[...]

    # All input->hidden contributions in one MXU matmul, produced directly in
    # transposed (hidden-on-sublanes, batch-on-lanes) form:
    #   base_t[h, b] = sum_k whx_t[h, k] * x[b, k] + bh[h]
    base_t = jax.lax.dot_general(
        whxt_ref[...], x,
        dimension_numbers=(((1,), (1,)), ((), ())),   # NT: contract on n_input
        preferred_element_type=jnp.float32,
    ) + bht_ref[...]

    # Blocked sequential cascade.  Per block of 8 neurons:
    #   - cross-block terms: one small MXU matmul against prior activations
    #   - within-block strictly-lower terms: scalar(SMEM) * (1, Bt) vector FMAs
    # TODO(synk): for cascades with hundreds of neurons, wrap the block loop in
    # lax.fori_loop(unroll=True) with pl.ds offsets to bound trace size.
    n_blocks = n_hidden_pad // 8
    for blk in range(n_blocks):
        r0 = blk * 8
        acc = base_t[r0:r0 + 8, :]                               # (8, Bt)
        if r0 > 0:
            acc = acc + jnp.dot(
                whh_ref[r0:r0 + 8, :r0], ht_ref[:r0, :],
                preferred_element_type=jnp.float32)
        rows = []
        for i in range(8):
            a = acc[i:i + 1, :]                                  # (1, Bt)
            for j in range(i):
                a = a + whh_in_ref[(r0 + i) * 8 + j] * rows[j]   # scalar FMA
            rows.append(jax.nn.sigmoid(a))
        ht_ref[r0:r0 + 8, :] = jnp.concatenate(rows, axis=0)

    # Output GEMM: raw-input part + hidden part, both on the MXU.
    y = jnp.dot(x, woutx_ref[...], preferred_element_type=jnp.float32) + bout_ref[...]
    h_bt = ht_ref[...].T                                         # small (Bt, n_hid_pad)
    y = y + jnp.dot(h_bt, wouth_ref[...], preferred_element_type=jnp.float32)
    y_ref[...] = y


# ----------------------------------------------------------------------------
# Host-side packing (done once per cascade topology, NOT per forward call)
# ----------------------------------------------------------------------------
def pack_casper_params(out_w, out_b, hidden_ws=(), hidden_bs=()):
    """Repack PyTorch nn.Linear-layout CasPer parameters for the TPU kernel."""
    out_w = np.asarray(out_w, np.float32)
    out_b = np.asarray(out_b, np.float32)
    n_output, d_total = out_w.shape
    n_hidden = len(hidden_ws)
    n_input = d_total - n_hidden

    n_pad = _round_up(max(n_output, 1), 128)      # lane-dense output width
    if n_pad > 128:
        n_pad = _round_up(n_pad, 256)             # fill 256-wide MXU (v6e/v7x)

    wout_t = np.zeros((d_total, n_pad), np.float32)   # pre-transposed, zero-padded
    wout_t[:, :n_output] = out_w.T
    bout = np.zeros((1, n_pad), np.float32)
    bout[0, :n_output] = out_b.reshape(-1)

    params = {
        "n_input": n_input, "n_hidden": n_hidden,
        "n_output": n_output, "n_pad": n_pad,
        "woutx": jnp.asarray(wout_t[:n_input]),        # (n_input, N_pad)
        "bout": jnp.asarray(bout),                     # (1, N_pad)
    }
    if n_hidden == 0:
        return params

    n_hpad = _round_up(n_hidden, 8)                    # whole sublanes
    whx_t = np.zeros((n_hpad, n_input), np.float32)
    whh = np.zeros((n_hpad, n_hpad), np.float32)       # strictly lower triangular
    bh_t = np.zeros((n_hpad, 1), np.float32)
    for i, (w, b) in enumerate(zip(hidden_ws, hidden_bs)):
        w = np.asarray(w, np.float32).reshape(-1)      # (n_input + i,)
        whx_t[i, :] = w[:n_input]
        whh[i, :i] = w[n_input:]
        bh_t[i, 0] = float(np.asarray(b, np.float32).reshape(()))

    # Within-block strictly-lower weights, flattened for SMEM scalar reads.
    whh_inner = np.zeros((n_hpad, 8), np.float32)
    for i in range(n_hpad):
        r0 = (i // 8) * 8
        whh_inner[i, :i - r0] = whh[i, r0:i]

    wouth = np.zeros((n_hpad, n_pad), np.float32)      # padded rows stay zero
    wouth[:n_hidden] = wout_t[n_input:]

    params.update(
        n_hidden_pad=n_hpad,
        whx_t=jnp.asarray(whx_t),                      # (n_hpad, n_input)
        bh_t=jnp.asarray(bh_t),                        # (n_hpad, 1)
        whh=jnp.asarray(whh),                          # (n_hpad, n_hpad)
        whh_inner=jnp.asarray(whh_inner.reshape(-1)),  # (n_hpad * 8,) SMEM
        wouth=jnp.asarray(wouth),                      # (n_hpad, N_pad)
    )
    return params


# ----------------------------------------------------------------------------
# Forward
# ----------------------------------------------------------------------------
def casper_forward(x, params):
    n_input = params["n_input"]
    n_hidden = params["n_idden"] if "n_idden" in params else params["n_hidden"]
    n_output = params["n_output"]
    n_pad = params["n_pad"]

    x = jnp.asarray(x, jnp.float32)
    B = x.shape[0]

    # Batch tiling: cap at 256 (keeps y/base/h resident in the vreg file) and
    # aim for >= 2 grid steps so both v7x TensorCores get work and the
    # BlockSpec pipeline actually overlaps DMA with compute.
    bt = min(_round_up(pl.cdiv(B, 2), 8), 256)
    b_pad = _round_up(B, bt)
    if b_pad != B:
        x = jnp.pad(x, ((0, b_pad - B), (0, 0)))
    grid = (b_pad // bt,)

    cparams = pltpu.CompilerParams(dimension_semantics=("parallel",))

    if n_hidden == 0:  # iteration == 0: plain Linear
        cost = pl.CostEstimate(
            flops=2 * b_pad * n_input * n_pad,
            transcendentals=0,
            bytes_accessed=4 * (b_pad * n_input + b_pad * n_pad
                                + n_input * n_pad + n_pad))
        y = pl.pallas_call(
            _linear_kernel,
            out_shape=jax.ShapeDtypeStruct((b_pad, n_pad), jnp.float32),
            grid=grid,
            in_specs=[
                pl.BlockSpec((bt, n_input), lambda b: (b, 0)),
                pl.BlockSpec((n_input, n_pad), lambda b: (0, 0)),    # resident
                pl.BlockSpec((1, n_pad), lambda b: (0, 0)),          # resident
            ],
            out_specs=pl.BlockSpec((bt, n_pad), lambda b: (b, 0)),
            compiler_params=cparams,
            cost_estimate=cost,
        )(x, params["woutx"], params["bout"])
        return y[:B, :n_output]

    n_hpad = params["n_hidden_pad"]
    cost = pl.CostEstimate(
        flops=(2 * b_pad * n_input * (n_pad + n_hpad)
               + 2 * b_pad * n_hpad * n_pad
               + b_pad * n_hpad * n_hpad),
        transcendentals=b_pad * n_hpad,
        bytes_accessed=4 * (b_pad * n_input + b_pad * n_pad
                            + n_input * (n_pad + n_hpad)
                            + n_hpad * (n_pad + n_hpad + 9) + n_pad))
    kernel = functools.partial(_cascade_kernel, n_hidden_pad=n_hpad)
    y = pl.pallas_call(
        kernel,
        out_shape=jax.ShapeDtypeStruct((b_pad, n_pad), jnp.float32),
        grid=grid,
        in_specs=[
            pl.BlockSpec((bt, n_input), lambda b: (b, 0)),
            pl.BlockSpec((n_hpad, n_input), lambda b: (0, 0)),       # resident
            pl.BlockSpec((n_hpad, 1), lambda b: (0, 0)),             # resident
            pl.BlockSpec((n_hpad, n_hpad), lambda b: (0, 0)),        # resident
            pl.BlockSpec(memory_space=pltpu.MemorySpace.SMEM),       # whh_inner
            pl.BlockSpec((n_input, n_pad), lambda b: (0, 0)),        # resident
            pl.BlockSpec((n_hpad, n_pad), lambda b: (0, 0)),         # resident
            pl.BlockSpec((1, n_pad), lambda b: (0, 0)),              # resident
        ],
        out_specs=pl.BlockSpec((bt, n_pad), lambda b: (b, 0)),
        scratch_shapes=[pltpu.VMEM((n_hpad, bt), jnp.float32)],
        compiler_params=cparams,
        cost_estimate=cost,
    )(x, params["whx_t"], params["bh_t"], params["whh"], params["whh_inner"],
      params["woutx"], params["wouth"], params["bout"])
    return y[:B, :n_output]


# ----------------------------------------------------------------------------
# Pure-JAX reference mirroring the PyTorch forward exactly
# ----------------------------------------------------------------------------
def casper_ref(x, out_w, out_b, hidden_ws=(), hidden_bs=()):
    output = x
    for w, b in zip(hidden_ws, hidden_bs):
        ho = jax.nn.sigmoid(output @ w.T + b)
        output = jnp.concatenate([output, ho], axis=1)
    return output @ out_w.T + out_b


if __name__ == "__main__":
    B, n_input, n_output, iteration = 8, 32, 4, 3

    key = jax.random.PRNGKey(0)
    keys = jax.random.split(key, 16)
    x = jax.random.normal(keys[0], (B, n_input), jnp.float32)

    # --- iteration == 0 : fresh module, forward is just self.out(x) ---------
    w0 = 0.1 * jax.random.normal(keys[1], (n_output, n_input), jnp.float32)
    b0 = 0.1 * jax.random.normal(keys[2], (n_output,), jnp.float32)
    p0 = pack_casper_params(w0, b0)
    y0 = jax.block_until_ready(casper_forward(x, p0))
    np.testing.assert_allclose(
        np.asarray(y0), np.asarray(casper_ref(x, w0, b0)), rtol=1e-5, atol=1e-5
    )

    # --- iteration == 3 : two installed hidden neurons + new_hidden ---------
    hidden_ws, hidden_bs = [], []
    for i in range(iteration):
        hidden_ws.append(
            0.1 * jax.random.normal(keys[3 + 2 * i], (1, n_input + i), jnp.float32)
        )
        hidden_bs.append(
            0.1 * jax.random.normal(keys[4 + 2 * i], (1,), jnp.float32)
        )
    w_out = 0.1 * jax.random.normal(keys[10], (n_output, n_input + iteration), jnp.float32)
    b_out = 0.1 * jax.random.normal(keys[11], (n_output,), jnp.float32)

    p3 = pack_casper_params(w_out, b_out, hidden_ws, hidden_bs)
    y = jax.block_until_ready(casper_forward(x, p3))
    y_ref = casper_ref(x, w_out, b_out, hidden_ws, hidden_bs)
    np.testing.assert_allclose(np.asarray(y), np.asarray(y_ref), rtol=1e-4, atol=1e-4)

    # --- iteration == 1 path + non-multiple-of-8 batch (exercises padding) ---
    x2 = jax.random.normal(keys[12], (10, n_input), jnp.float32)
    w_out1 = 0.1 * jax.random.normal(keys[13], (n_output, n_input + 1), jnp.float32)
    b_out1 = 0.1 * jax.random.normal(keys[14], (n_output,), jnp.float32)
    p1 = pack_casper_params(w_out1, b_out1, hidden_ws[:1], hidden_bs[:1])
    y1 = jax.block_until_ready(casper_forward(x2, p1))
    y1_ref = casper_ref(x2, w_out1, b_out1, hidden_ws[:1], hidden_bs[:1])
    np.testing.assert_allclose(np.asarray(y1), np.asarray(y1_ref), rtol=1e-4, atol=1e-4)

    print("KERNEL_OK")
</pallas_src>

<mosaic_0001>
module attributes {stable_mosaic.version = 11 : i64} {
  func.func @_linear_kernel(%arg0: i32, %arg1: memref<8x32xf32, #tpu.memory_space<vmem>>, %arg2: memref<32x128xf32, #tpu.memory_space<vmem>>, %arg3: memref<1x128xf32, #tpu.memory_space<vmem>>, %arg4: memref<8x128xf32, #tpu.memory_space<vmem>>) attributes {dimension_semantics = [#tpu.dimension_semantics<parallel>], iteration_bounds = array<i64: 1>, scalar_prefetch = 0 : i64, scratch_operands = 0 : i64, tpu.core_type = #tpu.core_type<tc>, window_params = [{transform_indices = @transform_0, window_bounds = array<i64: 8, 32>}, {pipeline_mode = #tpu.pipeline_mode<synchronous>, transform_indices = @transform_1, window_bounds = array<i64: 32, 128>}, {pipeline_mode = #tpu.pipeline_mode<synchronous>, transform_indices = @transform_2, window_bounds = array<i64: 1, 128>}, {transform_indices = @transform_3, window_bounds = array<i64: 8, 128>}]} {
    %c0 = arith.constant 0 : index
    %c0_0 = arith.constant 0 : index
    %0 = vector.load %arg1[%c0, %c0_0] : memref<8x32xf32, #tpu.memory_space<vmem>>, vector<8x32xf32>
    %c0_1 = arith.constant 0 : index
    %c0_2 = arith.constant 0 : index
    %1 = vector.load %arg2[%c0_1, %c0_2] : memref<32x128xf32, #tpu.memory_space<vmem>>, vector<32x128xf32>
    %cst = arith.constant dense<0.000000e+00> : vector<8x128xf32>
    %2 = tpu.matmul %0, %1, %cst {dimension_numbers = #tpu.dot_dimension_numbers<[1], [0], [0], [1], [0, 0, 1, 1], [], []>} : vector<8x32xf32>, vector<32x128xf32>, vector<8x128xf32> -> vector<8x128xf32>
    %c0_3 = arith.constant 0 : index
    %c0_4 = arith.constant 0 : index
    %3 = vector.load %arg3[%c0_3, %c0_4] : memref<1x128xf32, #tpu.memory_space<vmem>>, vector<1x128xf32>
    %4 = vector.broadcast %3 : vector<1x128xf32> to vector<8x128xf32>
    %5 = arith.addf %2, %4 : vector<8x128xf32>
    %c0_5 = arith.constant 0 : index
    %c0_6 = arith.constant 0 : index
    %6 = vector.load %arg4[%c0_5, %c0_6] : memref<8x128xf32, #tpu.memory_space<vmem>>, vector<8x128xf32>
    tpu.vector_store %arg4[%c0_5, %c0_6], %5 {strides = array<i32>} : memref<8x128xf32, #tpu.memory_space<vmem>>, vector<8x128xf32>,
    return
  }
  func.func @transform_0(%arg0: i32) -> (i32, i32) {
    %c0_i32 = arith.constant 0 : i32
    %c0_i32_0 = arith.constant 0 : i32
    return %arg0, %c0_i32 : i32, i32
  }
  func.func @transform_1(%arg0: i32) -> (i32, i32) {
    %c0_i32 = arith.constant 0 : i32
    %c0_i32_0 = arith.constant 0 : i32
    %c0_i32_1 = arith.constant 0 : i32
    return %c0_i32, %c0_i32_0 : i32, i32
  }
  func.func @transform_2(%arg0: i32) -> (i32, i32) {
    %c0_i32 = arith.constant 0 : i32
    %c0_i32_0 = arith.constant 0 : i32
    %c0_i32_1 = arith.constant 0 : i32
    return %c0_i32, %c0_i32_0 : i32, i32
  }
  func.func @transform_3(%arg0: i32) -> (i32, i32) {
    %c0_i32 = arith.constant 0 : i32
    %c0_i32_0 = arith.constant 0 : i32
    return %arg0, %c0_i32 : i32, i32
  }
}

</mosaic_0001>

<bundles_post_ra>
// kernel: tpu_custom_call.1
= control target key start
LH: loop header
LB: loop body
LE: loop exit
PB: predicated region body
PF: predicated region fallthrough
CT: control target
= control target key end

     0   :  { %8 = vsyncpa [#allocation3], 0  ;;  %s322_s0 = inlined_call_operand.hbm [shape: f32[8,32], index: 0, kind: input, shape index: {}]   ;;  %s323_s1 = inlined_call_operand.hbm [shape: f32[32,128], index: 1, kind: input, shape index: {}]   ;;  %s324_s2 = inlined_call_operand.vmem [shape: f32[1,128], index: 2, kind: input, shape index: {}]   ;;  %s325_s3 = inlined_call_operand.hbm [shape: f32[8,128], index: 3, kind: output, shape index: {}]  }
   0x1   :  { %9 = vsyncpa [#allocation6], 0 }
   0x2   :  { %10 = vsyncpa [#allocation4], 0  ;;  %s248_s12 = smov [#allocation2]   ;;  %s249_s14 = smov [#allocation5]  }
   0x3   :  { %s17_s13 = sshll.u32 %s248_s12, 4  ;;  %s26_s15 = sshll.u32 %s249_s14, 4  ;;  %s18_s13 = int_to_ptr.vmem [resolvable:$true] %s17_s13  ;;  %s276_s15 = int_to_ptr.vmem [resolvable:$true] %s26_s15 }
   0x4   :  { %s176_s18 = scalar_lea.hbm %s322_s0, 128 }
   0x5   :  { %p177_p0 = scmp.ne.s32.totalorder %s322_s0, %s176_s18  ;;  %p180_p1 = scmp.lt.u32.totalorder %s176_s18, %s322_s0 }
   0x7   :  { %p182_p2 = pnand %p180_p1, %p177_p0 }
   0x9   :  { %185 = shalt.err (!%p182_p2)
}
   0xa   :  { %s186_s23 = scalar_lea.vmem %s18_s13, 128  ;;  %p191_p4 = scmp.lt.s32.totalorder %s18_s13, %s18_s13 }
   0xb   :  { %p187_p3 = scmp.ne.s32.totalorder %s18_s13, %s186_s23  ;;  %p192_p5 = scmp.lt.s32.totalorder %s186_s23, %s186_s23 }
   0xd   :  { %p193_p6 = por %p192_p5, %p191_p4 }
   0xf   :  { %p194_p7 = pnand %p193_p6, %p187_p3 }
  0x11   :  { %197 = shalt.err (!%p194_p7)
}
  0x12   :  { %20 = dma.hbm_to_vmem [thread:$0]  %s322_s0, 128, %s18_s13, [#allocation3]  }
  0x13   :  { %s198_s28 = scalar_lea.hbm %s323_s1, 512 }
  0x14   :  { %p199_p8 = scmp.ne.s32.totalorder %s323_s1, %s198_s28  ;;  %p202_p9 = scmp.lt.u32.totalorder %s198_s28, %s323_s1 }
  0x16   :  { %p204_p10 = pnand %p202_p9, %p199_p8 }
  0x18   :  { %207 = shalt.err (!%p204_p10)
}
  0x19   :  { %s208_s6 = scalar_lea.vmem %s276_s15, 512  ;;  %p213_p12 = scmp.lt.s32.totalorder %s276_s15, %s276_s15 }
  0x1a   :  { %p209_p11 = scmp.ne.s32.totalorder %s276_s15, %s208_s6  ;;  %p214_p13 = scmp.lt.s32.totalorder %s208_s6, %s208_s6 }
  0x1c   :  { %p215_p0 = por %p214_p13, %p213_p12 }
  0x1e   :  { %p216_p1 = pnand %p215_p0, %p209_p11 }
  0x20   :  { %219 = shalt.err (!%p216_p1)
}
  0x21   :  { %s250_s0 = smov 128   ;;  %s251_s7 = smov 8  }
  0x22   :  { %32 = dma.hbm_to_vmem [thread:$0]  %s323_s1, 512, %s276_s15, [#allocation6], %s250_s0, %s250_s0, %s251_s7  }
  0x23   :  { %242 = dma.done.wait [#allocation3], 128  }
  0x24   :  { %243 = vsyncadd [#allocation3], 4294967168 }
  0x25   :  { %244 = dma.done.wait [#allocation6], 512  }
  0x26   :  { %245 = vsyncadd [#allocation6], 4294966784  ;;  %v252_v0 = vmov 0.0|0.0   ;;  %vm253_vm0 = vmmov 0   ;;  %v254_v1 = vmov 0.0   ;;  %v42_v2 = vld [vmem:[#allocation5] sm:$0xff] }
  0x27   :  { %162 = vmatprep.subr.bf16.mxu0 %v252_v0  ;;  %159 = vmatprep.mubr.msk.f32.mxu0 %vm253_vm0, %v254_v1  ;;  %v43_v3 = vld [vmem:[#allocation5 + $0x8] sm:$0xff]  ;;  %v44_v4 = vld [vmem:[#allocation5 + $0x10] sm:$0xff]  ;;  %v45_v6 = vld [vmem:[#allocation5 + $0x18] sm:$0xff]  ;;  %vm53_vm1 = vcmask 261120   ;;  %s255_s11 = smov [#allocation7]  }
  0x28   :  { %v163_v5 = vpack.c.bf16 %v43_v3, %v42_v2  ;;  %v166_v7 = vpack.c.bf16 %v45_v6, %v44_v4  ;;  %v41_v8 = vld [vmem:[#allocation2] sm:$0xff]  ;;  %s134_s12 = sshll.u32 %s255_s11, 4  ;;  %s135_s12 = int_to_ptr.vmem [resolvable:$true] %s134_s12 }
  0x29   :  { %v144_v9 = vld [vmem:[%s324_s2] ss:$0 sm:$0xff]  ;;  %s220_s13 = scalar_lea.vmem %s135_s12, 128  ;;  %p225_p3 = scmp.lt.s32.totalorder %s135_s12, %s135_s12 }
  0x2a   :  { %164 = vmatpush3.bf16.msra.mxu0 %v163_v5  ;;  %p221_p2 = scmp.ne.s32.totalorder %s135_s12, %s220_s13  ;;  %p226_p4 = scmp.lt.s32.totalorder %s220_s13, %s220_s13 }
  0x2b   :  { %165 = vmatprep.subr.bf16.mxu0 %v252_v0 }
  0x2c   :  { %p227_p5 = por %p226_p4, %p225_p3 }
  0x2e   :  { %167 = vmatpush3.bf16.msra.mxu0 %v166_v7  ;;  %p228_p6 = pnand %p227_p5, %p221_p2 }
  0x31   :  { %160 = vmatmul.mubr.msk.f32.vlgmr.msra.gmra.mrb[0].mxu0 %vm53_vm1, %v41_v8 }
 0x104   :  { %v123_v10 = vpop.f32.mrb[0].mxu0 }
 0x105   :  { %v124_v11 = vadd.f32 %v144_v9, %v123_v10  ;;  %v161_v12 = vpop.f32.mrb[1].mxu0 }
 0x107   :  { %127 = vst [vmem:[#allocation7] sm:$0xff] %v124_v11 }
 0x108   :  { %231 = shalt.err (!%p228_p6)
}
 0x109   :  { %s232_s16 = scalar_lea.hbm %s325_s3, 128 }
 0x10a   :  { %p233_p7 = scmp.ne.s32.totalorder %s325_s3, %s232_s16  ;;  %p236_p8 = scmp.lt.u32.totalorder %s232_s16, %s325_s3 }
 0x10c   :  { %p238_p9 = pnand %p236_p8, %p233_p7 }
 0x10e   :  { %241 = shalt.err (!%p238_p9)
}
 0x10f   :  { %137 = dma.vmem_to_hbm [thread:$0]  %s135_s12, 128, %s325_s3, [#allocation4]  }
 0x110   :  { %246 = dma.done.wait [#allocation4], 128  }
 0x111   :  { %247 = vsyncadd [#allocation4], 4294967168 }
 0x112   :  { %141 = vsyncpa [#allocation3], 1 }
 0x113   :  { %142 = vsyncpa [#allocation6], 1 }
 0x114   :  { %143 = vsyncpa [#allocation4], 1 }

</bundles_post_ra>
